<compile_context>
chip_gen: v5e
topology: v5e:2x2
jax: 0.10.0
libtpu: 0.0.40
codegen_flags: <defaults>
</compile_context>

<pallas_src>
import functools

import jax
import jax.numpy as jnp
from jax.experimental import pallas as pl
from jax.experimental.pallas import tpu as pltpu

ALPHA = 1.0
GAMMA = 2


def _per_row_focal(x, t, *, alpha, gamma):
    """x: (tn, C) f32, t: (tn, 1) i32 -> (tn, 1) f32 per-row focal loss."""
    m = jnp.max(x, axis=-1, keepdims=True)                               # (tn,1)
    lse = m + jnp.log(jnp.sum(jnp.exp(x - m), axis=-1, keepdims=True))   # (tn,1)
    # Gather logit at the target class via one-hot select (no dynamic gather on TPU).
    col = jax.lax.broadcasted_iota(jnp.int32, x.shape, 1)                # (tn,C)
    picked = jnp.sum(jnp.where(col == t, x, 0.0), axis=-1, keepdims=True)
    ce = lse - picked
    pt = jnp.exp(-ce)                                                    # EUP
    d = 1.0 - pt
    mod = d * d if gamma == 2 else d ** gamma                            # VALU muls
    return alpha * mod * ce


def _focal_sum_kernel(x_ref, t_ref, psum_ref, *, n_total, tile_n, alpha, gamma):
    x = x_ref[...].astype(jnp.float32)
    fl = _per_row_focal(x, t_ref[...], alpha=alpha, gamma=gamma)         # (tn,1)
    # Mask rows that are padding (global row index >= n_total).
    row0 = pl.program_id(0) * tile_n
    rows = jax.lax.broadcasted_iota(jnp.int32, fl.shape, 0) + row0
    fl = jnp.where(rows < n_total, fl, 0.0)
    s = jnp.sum(fl)
    # Lane-dense (8,128) partial-sum block: unmasked stores, one contiguous DMA.
    psum_ref[...] = jnp.full(psum_ref.shape, s, dtype=psum_ref.dtype)


def _focal_per_sample_kernel(x_ref, t_ref, fl_ref, *, alpha, gamma):
    x = x_ref[...].astype(jnp.float32)
    fl_ref[...] = _per_row_focal(x, t_ref[...], alpha=alpha, gamma=gamma)


def _round_up(x, m):
    return (x + m - 1) // m * m


def focal_loss_base_ce(logits, targets, *, alpha=ALPHA, gamma=GAMMA,
                       reduce=True, tile_n=None):
    """Pallas implementation of FocalLossBaseCE.forward.

    logits:  (N, C) float (f32 or bf16)
    targets: (N,)   int class indices in [0, C)
    returns: scalar mean focal loss if reduce=True else per-sample (N,) losses.
    """
    N, C = logits.shape
    itemsize = jnp.dtype(logits.dtype).itemsize

    if tile_n is None:
        # ~16 MiB per logits block => ~32 MiB double-buffered; safe on v7x (64 MiB VMEM).
        rows_by_vmem = max(8, (16 << 20) // max(C * itemsize, 1))
        tile_n = min(512, rows_by_vmem)
    tile_n = max(8, (tile_n // 8) * 8)
    tile_n = min(tile_n, _round_up(N, 8))

    n_pad = _round_up(N, tile_n)
    num_tiles = n_pad // tile_n

    t2d = targets.astype(jnp.int32).reshape(N, 1)
    if n_pad != N:
        logits = jnp.pad(logits, ((0, n_pad - N), (0, 0)))
        t2d = jnp.pad(t2d, ((0, n_pad - N), (0, 0)))

    vmem_limit = int(min(max(2 * tile_n * C * itemsize + (8 << 20), 16 << 20), 48 << 20))
    compiler_params = pltpu.CompilerParams(
        dimension_semantics=("parallel",),   # no cross-tile state -> megacore-safe
        vmem_limit_bytes=vmem_limit,
    )
    in_specs = [
        pl.BlockSpec((tile_n, C), lambda i: (i, 0)),
        pl.BlockSpec((tile_n, 1), lambda i: (i, 0)),
    ]

    if reduce:
        kernel = functools.partial(_focal_sum_kernel, n_total=N, tile_n=tile_n,
                                   alpha=alpha, gamma=gamma)
        psum = pl.pallas_call(
            kernel,
            out_shape=jax.ShapeDtypeStruct((num_tiles * 8, 128), jnp.float32),
            grid_spec=pltpu.PrefetchScalarGridSpec(
                num_scalar_prefetch=0,
                grid=(num_tiles,),
                in_specs=in_specs,
                out_specs=pl.BlockSpec((8, 128), lambda i: (i, 0)),
            ),
            compiler_params=compiler_params,
        )(logits, t2d)
        # One partial sum per tile (replicated over its 8x128 block).
        return jnp.sum(psum[::8, 0]) / jnp.float32(N)

    kernel = functools.partial(_focal_per_sample_kernel, alpha=alpha, gamma=gamma)
    fl = pl.pallas_call(
        kernel,
        out_shape=jax.ShapeDtypeStruct((n_pad, 1), jnp.float32),
        grid_spec=pltpu.PrefetchScalarGridSpec(
            num_scalar_prefetch=0,
            grid=(num_tiles,),
            in_specs=in_specs,
            out_specs=pl.BlockSpec((tile_n, 1), lambda i: (i, 0)),
        ),
        compiler_params=compiler_params,
    )(logits, t2d)
    # TODO(synk): a fully lane-dense per-sample output needs a sublane->lane
    # relayout in-kernel; kept the (N,1) column layout here for lowering robustness.
    return fl[:N, 0]


def _reference(logits, targets, reduce=True, alpha=ALPHA, gamma=GAMMA):
    # pure-JAX reference matching torch.nn.functional.cross_entropy(reduction='none')
    logp = jax.nn.log_softmax(logits.astype(jnp.float32), axis=-1)
    ce = -jnp.take_along_axis(logp, targets[:, None], axis=-1)[:, 0]
    pt = jnp.exp(-ce)
    fl = alpha * (1.0 - pt) ** gamma * ce
    return jnp.mean(fl) if reduce else fl


if __name__ == "__main__":
    key = jax.random.PRNGKey(0)
    k1, k2, k3, k4 = jax.random.split(key, 4)

    # Case 1: N multiple of 8 (no padding), reduce=True and reduce=False.
    N, C = 16, 32
    logits = jax.random.normal(k1, (N, C), dtype=jnp.float32)
    targets = jax.random.randint(k2, (N,), 0, C, dtype=jnp.int32)

    out_mean = jax.block_until_ready(focal_loss_base_ce(logits, targets, reduce=True))
    ref_mean = _reference(logits, targets, reduce=True)
    assert jnp.allclose(out_mean, ref_mean, atol=1e-5, rtol=1e-5), (out_mean, ref_mean)

    out_fl = jax.block_until_ready(focal_loss_base_ce(logits, targets, reduce=False))
    ref_fl = _reference(logits, targets, reduce=False)
    assert jnp.allclose(out_fl, ref_fl, atol=1e-5, rtol=1e-5)

    # Case 2: N not a multiple of the tile (exercises padding + row masking).
    N2 = 13
    logits2 = jax.random.normal(k3, (N2, C), dtype=jnp.float32)
    targets2 = jax.random.randint(k4, (N2,), 0, C, dtype=jnp.int32)
    out_mean2 = jax.block_until_ready(focal_loss_base_ce(logits2, targets2, reduce=True))
    ref_mean2 = _reference(logits2, targets2, reduce=True)
    assert jnp.allclose(out_mean2, ref_mean2, atol=1e-5, rtol=1e-5), (out_mean2, ref_mean2)

    print("KERNEL_OK")
</pallas_src>

<mosaic_0001>
module attributes {stable_mosaic.version = 11 : i64} {
  func.func @_focal_sum_kernel(%arg0: i32, %arg1: memref<16x32xf32, #tpu.memory_space<vmem>>, %arg2: memref<16x1xi32, #tpu.memory_space<vmem>>, %arg3: memref<8x128xf32, #tpu.memory_space<vmem>>) attributes {dimension_semantics = [#tpu.dimension_semantics<parallel>], iteration_bounds = array<i64: 1>, scalar_prefetch = 0 : i64, scratch_operands = 0 : i64, tpu.core_type = #tpu.core_type<tc>, window_params = [{transform_indices = @transform_0, window_bounds = array<i64: 16, 32>}, {transform_indices = @transform_1, window_bounds = array<i64: 16, 1>}, {transform_indices = @transform_2, window_bounds = array<i64: 8, 128>}]} {
    %c0 = arith.constant 0 : index
    %c0_0 = arith.constant 0 : index
    %0 = vector.load %arg1[%c0, %c0_0] : memref<16x32xf32, #tpu.memory_space<vmem>>, vector<16x32xf32>
    %c0_1 = arith.constant 0 : index
    %c0_2 = arith.constant 0 : index
    %1 = vector.load %arg2[%c0_1, %c0_2] : memref<16x1xi32, #tpu.memory_space<vmem>>, vector<16x1xi32>
    %cst = arith.constant dense<0xFF800000> : vector<16xf32>
    %2 = vector.multi_reduction <maximumf>, %0, %cst [1] : vector<16x32xf32> to vector<16xf32>
    %3 = vector.shape_cast %2 : vector<16xf32> to vector<16x1xf32>
    %4 = vector.broadcast %3 : vector<16x1xf32> to vector<16x32xf32>
    %5 = arith.subf %0, %4 : vector<16x32xf32>
    %6 = math.exp %5 : vector<16x32xf32>
    %cst_3 = arith.constant dense<0.000000e+00> : vector<16xf32>
    %7 = vector.multi_reduction <add>, %6, %cst_3 [1] : vector<16x32xf32> to vector<16xf32>
    %8 = vector.shape_cast %7 : vector<16xf32> to vector<16x1xf32>
    %9 = math.log %8 : vector<16x1xf32>
    %10 = arith.addf %3, %9 : vector<16x1xf32>
    %11 = tpu.iota {dimensions = array<i32: 1>} : vector<16x32xi32>
    %12 = vector.broadcast %1 : vector<16x1xi32> to vector<16x32xi32>
    %13 = arith.cmpi eq, %11, %12 : vector<16x32xi32>
    %cst_4 = arith.constant 0.000000e+00 : f32
    %14 = vector.broadcast %cst_4 : f32 to vector<16x32xf32>
    %15 = arith.select %13, %0, %14 : vector<16x32xi1>, vector<16x32xf32>
    %cst_5 = arith.constant dense<0.000000e+00> : vector<16xf32>
    %16 = vector.multi_reduction <add>, %15, %cst_5 [1] : vector<16x32xf32> to vector<16xf32>
    %17 = vector.shape_cast %16 : vector<16xf32> to vector<16x1xf32>
    %18 = arith.subf %10, %17 : vector<16x1xf32>
    %cst_6 = arith.constant 0.000000e+00 : f32
    %19 = vector.broadcast %cst_6 : f32 to vector<16x1xf32>
    %20 = arith.subf %19, %18 : vector<16x1xf32>
    %21 = math.exp %20 : vector<16x1xf32>
    %cst_7 = arith.constant 1.000000e+00 : f32
    %22 = vector.broadcast %cst_7 : f32 to vector<16x1xf32>
    %23 = arith.subf %22, %21 : vector<16x1xf32>
    %24 = arith.mulf %23, %23 : vector<16x1xf32>
    %cst_8 = arith.constant 1.000000e+00 : f32
    %25 = vector.broadcast %cst_8 : f32 to vector<16x1xf32>
    %26 = arith.mulf %25, %24 : vector<16x1xf32>
    %27 = arith.mulf %26, %18 : vector<16x1xf32>
    %c16_i32 = arith.constant 16 : i32
    %28 = arith.muli %arg0, %c16_i32 : i32
    %29 = tpu.iota {dimensions = array<i32: 0>} : vector<16x1xi32>
    %30 = vector.broadcast %28 : i32 to vector<16x1xi32>
    %31 = arith.addi %29, %30 : vector<16x1xi32>
    %c16_i32_9 = arith.constant 16 : i32
    %32 = vector.broadcast %c16_i32_9 : i32 to vector<16x1xi32>
    %33 = arith.cmpi slt, %31, %32 : vector<16x1xi32>
    %cst_10 = arith.constant 0.000000e+00 : f32
    %34 = vector.broadcast %cst_10 : f32 to vector<16x1xf32>
    %35 = arith.select %33, %27, %34 : vector<16x1xi1>, vector<16x1xf32>
    %36 = vector.shape_cast %35 : vector<16x1xf32> to vector<1x16x1xf32>
    %cst_11 = arith.constant dense<0.000000e+00> : vector<1xf32>
    %37 = vector.multi_reduction <add>, %36, %cst_11 [1, 2] : vector<1x16x1xf32> to vector<1xf32>
    %38 = vector.shape_cast %37 : vector<1xf32> to vector<1x1x1xf32>
    %39 = vector.extract %38[0, 0, 0] : f32 from vector<1x1x1xf32>
    %40 = vector.broadcast %39 : f32 to vector<8x128xf32>
    %c0_12 = arith.constant 0 : index
    %c0_13 = arith.constant 0 : index
    %41 = vector.load %arg3[%c0_12, %c0_13] : memref<8x128xf32, #tpu.memory_space<vmem>>, vector<8x128xf32>
    tpu.vector_store %arg3[%c0_12, %c0_13], %40 {strides = array<i32>} : memref<8x128xf32, #tpu.memory_space<vmem>>, vector<8x128xf32>,
    return
  }
  func.func @transform_0(%arg0: i32) -> (i32, i32) {
    %c0_i32 = arith.constant 0 : i32
    %c0_i32_0 = arith.constant 0 : i32
    return %arg0, %c0_i32 : i32, i32
  }
  func.func @transform_1(%arg0: i32) -> (i32, i32) {
    %c0_i32 = arith.constant 0 : i32
    %c0_i32_0 = arith.constant 0 : i32
    return %arg0, %c0_i32 : i32, i32
  }
  func.func @transform_2(%arg0: i32) -> (i32, i32) {
    %c0_i32 = arith.constant 0 : i32
    %c0_i32_0 = arith.constant 0 : i32
    return %arg0, %c0_i32 : i32, i32
  }
}

</mosaic_0001>

<bundles_post_ra>
// kernel: tpu_custom_call.1
= control target key start
LH: loop header
LB: loop body
LE: loop exit
PB: predicated region body
PF: predicated region fallthrough
CT: control target
= control target key end

     0   :  { %vm16_vm0 = vcmask 261120   ;;  %v159_v3 = vmov 0   ;;  %s197_s0 = inlined_call_operand.vmem [shape: f32[16,32], index: 0, kind: input, shape index: {}]   ;;  %s198_s1 = inlined_call_operand.vmem [shape: s32[16,1], index: 1, kind: input, shape index: {}]   ;;  %s199_s2 = inlined_call_operand.hbm [shape: f32[8,128], index: 2, kind: output, shape index: {}]  }
   0x1   :  { %v12_v0 = vld [vmem:[%s197_s0] sm:$0xff]  ;;  %119 = vset.pattern.permute.xlu1 %v159_v3  ;;  %120 = vset.pattern.permute.xlu0 %v159_v3 }
   0x2   :  { %v14_v1 = vld [vmem:[%s198_s1] sm:$0xff]  ;;  %v17_v2 = vsel %vm16_vm0, %v12_v0, -inf }
   0x3   :  { %7 = vsyncpa [#allocation3], 0  ;;  %18 = vmax.xlane.f32.xlu0 %v17_v2  ;;  %44 = vperm.xlu1 %119, %v14_v1   ;;  %v13_v4 = vld [vmem:[%s197_s0 + $0x8] sm:$0xff]  ;;  %v41_v7 = vlaneseq  ;;  %vm84_vm3 = vcmask 7168   ;;  %s160_s0 = smov [#allocation2]   ;;  %s106_s19 = sshll.u32 %s199_s2, 4  ;;  %s107_s19 = int_to_ptr.hbm [resolvable:$true] %s106_s19 }
   0x4   :  { %v20_v5 = vsel %vm16_vm0, %v13_v4, -inf  ;;  %v15_v6 = vld [vmem:[%s198_s1 + $0x8] sm:$0xff]  ;;  %s104_s1 = sshll.u32 %s160_s0, 4  ;;  %s105_s1 = int_to_ptr.vmem [resolvable:$true] %s104_s1 }
   0x5   :  { %v42_v8 = vand.u32 127, %v41_v7 }
   0xb   :  { %21 = vmax.xlane.f32.xlu0 %v20_v5  ;;  %47 = vperm.xlu1 %119, %v15_v6  }
  0x75   :  { %v45_v9 = vpop.permute.xlu1 %44 }
  0x76   :  { %v19_v10 = vpop.xlane.xlu0 %18  ;;  %vm49_vm1 = vcmp.eq.s32.totalorder %v42_v8, %v45_v9 }
  0x77   :  { %v23_v11 = vsub.f32 %v12_v0, %v19_v10  ;;  %v51_v12 = vsel %vm49_vm1, %v12_v0, 0.0 }
  0x78   :  { %v53_v13 = vsel %vm16_vm0, %v51_v12, 0.0 }
  0x79   :  { %v25_v14 = vmul.f32 1.442695, %v23_v11  ;;  %54 = vadd.xlane.f32.xlu0 %v53_v13 }
  0x7b   :  { %121 = vpow2.f32 %v25_v14 }
  0x7d   :  { %v48_v15 = vpop.permute.xlu1 %47 }
  0x7e   :  { %v22_v16 = vpop.xlane.xlu0 %21  ;;  %vm50_vm2 = vcmp.eq.s32.totalorder %v42_v8, %v48_v15 }
  0x7f   :  { %v24_v17 = vsub.f32 %v13_v4, %v22_v16  ;;  %v52_v18 = vsel %vm50_vm2, %v13_v4, 0.0 }
  0x80   :  { %v56_v19 = vsel %vm16_vm0, %v52_v18, 0.0 }
  0x81   :  { %v122_v20 = vpop.eup %121  ;;  %v27_v21 = vmul.f32 1.442695, %v24_v17  ;;  %57 = vadd.xlane.f32.xlu1 %v56_v19 }
  0x82   :  { %v29_v22 = vsel %vm16_vm0, %v122_v20, 0.0 }
  0x83   :  { %123 = vpow2.f32 %v27_v21  ;;  %30 = vadd.xlane.f32.xlu2 %v29_v22 }
  0x89   :  { %v124_v23 = vpop.eup %123 }
  0x8a   :  { %v32_v24 = vsel %vm16_vm0, %v124_v23, 0.0 }
  0x8b   :  { %33 = vadd.xlane.f32.xlu2 %v32_v24 }
  0xec   :  { %v55_v29 = vpop.xlane.xlu0 %54 }
  0xf4   :  { %v58_v37 = vpop.xlane.xlu1 %57 }
  0xf6   :  { %v31_v25 = vpop.xlane.xlu2 %30 }
  0xf7   :  { %125 = vlog2.f32 %v31_v25 }
  0xfd   :  { %v126_v26 = vpop.eup %125 }
  0xfe   :  { %v36_v27 = vmul.f32 0.6931472, %v126_v26  ;;  %v34_v28 = vpop.xlane.xlu2 %33 }
  0xff   :  { %127 = vlog2.f32 %v34_v28 }
 0x100   :  { %v39_v30 = vadd.f32 %v36_v27, %v19_v10 }
 0x102   :  { %v59_v31 = vsub.f32 %v39_v30, %v55_v29 }
 0x104   :  { %v61_v32 = vsub.f32 0.0, %v59_v31 }
 0x105   :  { %v128_v33 = vpop.eup %127 }
 0x106   :  { %v38_v34 = vmul.f32 0.6931472, %v128_v33  ;;  %v63_v35 = vmul.f32 1.442695, %v61_v32 }
 0x108   :  { %v40_v36 = vadd.f32 %v38_v34, %v22_v16  ;;  %129 = vpow2.f32 %v63_v35 }
 0x10a   :  { %v60_v38 = vsub.f32 %v40_v36, %v58_v37 }
 0x10c   :  { %v62_v39 = vsub.f32 0.0, %v60_v38 }
 0x10e   :  { %v130_v40 = vpop.eup %129  ;;  %v65_v41 = vmul.f32 1.442695, %v62_v39 }
 0x10f   :  { %v67_v42 = vsub.f32 1.0, %v130_v40 }
 0x110   :  { %131 = vpow2.f32 %v65_v41 }
 0x111   :  { %v69_v43 = vmul.f32 %v67_v42, %v67_v42 }
 0x113   :  { %v71_v47 = vmul.f32 %v69_v43, %v59_v31 }
 0x115   :  { %v85_v49 = vsel %vm84_vm3, %v71_v47, 0.0 }
 0x116   :  { %v132_v44 = vpop.eup %131 }
 0x117   :  { %v68_v45 = vsub.f32 1.0, %v132_v44 }
 0x119   :  { %v70_v46 = vmul.f32 %v68_v45, %v68_v45 }
 0x11b   :  { %v72_v48 = vmul.f32 %v70_v46, %v60_v38 }
 0x11d   :  { %v86_v50 = vsel %vm84_vm3, %v72_v48, 0.0 }
 0x11e   :  { %v87_v51 = vadd.f32 %v86_v50, %v85_v49 }
 0x120   :  { %88 = vadd.xlane.f32.xlu2 %v87_v51 }
 0x193   :  { %v89_v52 = vpop.xlane.xlu2 %88 }
 0x194   :  { %v90_v53 = vrot.slane %v89_v52, 4 }
 0x196   :  { %v91_v54 = vadd.f32 %v90_v53, %v89_v52 }
 0x198   :  { %v92_v55 = vrot.slane %v91_v54, 2 }
 0x19a   :  { %v93_v56 = vadd.f32 %v92_v55, %v91_v54 }
 0x19c   :  { %v94_v57 = vrot.slane %v93_v56, 1 }
 0x19e   :  { %v95_v58 = vadd.f32 %v94_v57, %v93_v56 }
 0x1a0   :  { %115 = vpush %v95_v58 }
 0x1d1   :  { %s116_s20 = spop %115 }
 0x1d2   :  { %v97_v59 = vstv %s116_s20 }
 0x1d3   :  { %98 = vst [vmem:[#allocation2] sm:$0xff] %v97_v59 }
 0x1d4   :  { %109 = dma.vmem_to_hbm [thread:$0]  %s105_s1, 128, %s107_s19, [#allocation3]  }
 0x1d5   :  { %157 = dma.done.wait [#allocation3], 128  }
 0x1d6   :  { %158 = vsyncadd [#allocation3], 4294967168 }
 0x1d7   :  { %114 = vsyncpa [#allocation3], 1 }

</bundles_post_ra>
